<compile_context>
chip_gen: v7x
topology: tpu7x:2x2x1
jax: 0.10.0
libtpu: 0.0.40
codegen_flags: <defaults>
</compile_context>

<pallas_src>
import functools
import numpy as np

import jax
import jax.numpy as jnp
from jax.experimental import pallas as pl
from jax.experimental.pallas import tpu as pltpu


_TAPS = tuple((dy, dx) for dy in range(3) for dx in range(3))

_CPARAMS = pltpu.CompilerParams(
    dimension_semantics=("parallel",),
    vmem_limit_bytes=64 * 1024 * 1024,
)


def _rup16(c):
    return ((c + 15) // 16) * 16


# -----------------------------------------------------------------------------
# Pallas kernels
# -----------------------------------------------------------------------------
def _conv_kernel(*args, n_in, w2, cpads, act):
    """Multi-input 3x3 conv + folded-BN shift + activation.

    x_refs[i]: (1, cpads[i], Pin) bf16 zero-padded flattened frame with row
    pitch w2; tap (dy, dx) is a uniform lane shift of dy*w2 + dx.
    col scratch: (9*sum(cpads), Pout) bf16 in-kernel im2col -> ONE fat-K dot.
    """
    x_refs = args[:n_in]
    w_ref, b_ref, o_ref, col_ref = args[n_in:]
    pout = o_ref.shape[2]

    base = 0
    for i in range(n_in):
        cp = cpads[i]
        for t, (dy, dx) in enumerate(_TAPS):
            off = dy * w2 + dx
            col_ref[base + t * cp:base + (t + 1) * cp, :] = x_refs[i][0, :, off:off + pout]
        base += 9 * cp

    y = jnp.dot(w_ref[...], col_ref[...], preferred_element_type=jnp.float32)
    y = y + b_ref[...]
    if act == "relu":
        y = jnp.maximum(y, 0.0)
    o_ref[0] = y.astype(o_ref.dtype)


def _gru_kernel(x_ref, h_ref, wih_ref, bih_ref, whh_ref, bhh_ref,
                o_ref, col_ref, rh_ref, *, w2, cp):
    """Fused ConvGRU: ih conv -> sigmoid -> r*h (VMEM slab) -> hh conv ->
    tanh -> h' = (1-z)*h + z*c.   No concat([x,h]): split weights.

    x_ref / h_ref: (1, cp, Pin) bf16 padded slabs (interior at lane offset
    w2+1).  col scratch rows: [x taps (9*cp) | h-or-rh taps (9*cp)].
    """
    pout = o_ref.shape[2]

    for t, (dy, dx) in enumerate(_TAPS):
        off = dy * w2 + dx
        col_ref[t * cp:(t + 1) * cp, :] = x_ref[0, :, off:off + pout]
        col_ref[(9 + t) * cp:(10 + t) * cp, :] = h_ref[0, :, off:off + pout]

    rz = jnp.dot(wih_ref[...], col_ref[...], preferred_element_type=jnp.float32)
    rz = jax.nn.sigmoid(rz + bih_ref[...])
    r = rz[:cp]
    z = rz[cp:]

    # h at output positions = interior of the padded h slab (no second h input)
    h_c = h_ref[0, :, w2 + 1:w2 + 1 + pout].astype(jnp.float32)

    # r*h into a zero-bordered padded slab held in VMEM (never touches HBM).
    rh_ref[...] = jnp.zeros(rh_ref.shape, rh_ref.dtype)
    rh_ref[:, w2 + 1:w2 + 1 + pout] = (r * h_c).astype(rh_ref.dtype)

    # Overwrite the h taps with r*h taps; the x taps are reused as-is.
    for t, (dy, dx) in enumerate(_TAPS):
        off = dy * w2 + dx
        col_ref[(9 + t) * cp:(10 + t) * cp, :] = rh_ref[:, off:off + pout]

    c = jnp.tanh(jnp.dot(whh_ref[...], col_ref[...],
                         preferred_element_type=jnp.float32) + bhh_ref[...])
    o_ref[0] = (1.0 - z) * h_c + z * c


def _resample_kernel(x_ref, mwT_ref, mh_ref, o_ref, t_ref, *, c):
    """Separable spatial resample, both passes in one kernel.

    x_ref: (1, C*Hi, Wi) bf16.  W-pass: one fat matmul -> (C*Hi, Wo) kept in
    a VMEM scratch.  H-pass: per-channel (Ho,Hi)@(Hi,Wo) dots.
    """
    hi = mh_ref.shape[1]
    t_ref[...] = jnp.dot(x_ref[0], mwT_ref[...],
                         preferred_element_type=jnp.float32).astype(t_ref.dtype)
    for ci in range(c):
        o_ref[0, ci] = jnp.dot(mh_ref[...], t_ref[ci * hi:(ci + 1) * hi, :],
                               preferred_element_type=jnp.float32).astype(o_ref.dtype)


# -----------------------------------------------------------------------------
# Host-side layout / weight-prep helpers (cheap glue)
# -----------------------------------------------------------------------------
def _slab(x, cpad, w2):
    """(B,C,H,W) -> bf16 (B, cpad, (H+3)*w2) zero-padded flattened slab.

    Spatial pad: top 1, bottom 2, left 1, right w2-W-1 (=1); channel pad to
    cpad (mult of 16).  The extra bottom row keeps the dy=2 tap of the last
    garbage-column positions in bounds (OOB within VMEM is silent on TPU).
    """
    B, C, H, W = x.shape
    xp = jnp.pad(x.astype(jnp.bfloat16),
                 ((0, 0), (0, cpad - C), (1, 2), (1, w2 - W - 1)))
    return xp.reshape(B, cpad, (H + 3) * w2)


def _prep_conv_w(w, ch_counts, cpads, scale=None):
    """PyTorch (Cout, sum(Cin_i), 3, 3) -> bf16 (Cout, 9*sum(cpads)).

    Column order: per input block, tap-major (ky, kx), then channel (padded
    to cpads[i] with zeros) -- must match the col scratch row order.
    Optionally folds a per-output-channel BN scale into the weights.
    """
    cout = w.shape[0]
    blocks, off = [], 0
    for cin, cp in zip(ch_counts, cpads):
        wi = jnp.transpose(w[:, off:off + cin], (0, 2, 3, 1))          # (Cout,3,3,cin)
        wi = jnp.pad(wi, ((0, 0), (0, 0), (0, 0), (0, cp - cin)))      # (Cout,3,3,cp)
        blocks.append(wi.reshape(cout, 9 * cp))
        off += cin
    wm = jnp.concatenate(blocks, axis=1) if len(blocks) > 1 else blocks[0]
    if scale is not None:
        wm = wm * scale[:, None]
    return wm.astype(jnp.bfloat16)


def _prep_gru_w(p, C, cp):
    """Build split / row-padded GRU weights.  ih rows: r at [0:C], z at
    [cp:cp+C] (PyTorch .split order is [r, z]); columns: [x taps | h taps]."""
    wih_cols = _prep_conv_w(p["ih_w"], [C, C], [cp, cp])               # (2C, 18cp)
    wih = jnp.zeros((2 * cp, 18 * cp), jnp.bfloat16)
    wih = wih.at[:C].set(wih_cols[:C]).at[cp:cp + C].set(wih_cols[C:])
    bih = jnp.zeros((2 * cp, 1), jnp.float32)
    bih = bih.at[:C, 0].set(p["ih_b"][:C]).at[cp:cp + C, 0].set(p["ih_b"][C:])

    whh_cols = _prep_conv_w(p["hh_w"], [C, C], [cp, cp])               # (C, 18cp)
    whh = jnp.zeros((cp, 18 * cp), jnp.bfloat16).at[:C].set(whh_cols)
    bhh = jnp.zeros((cp, 1), jnp.float32).at[:C, 0].set(p["hh_b"])
    return wih, bih, whh, bhh


# -----------------------------------------------------------------------------
# Pallas wrappers
# -----------------------------------------------------------------------------
def conv3x3_bn_relu(xs, w, bn_scale, bn_shift, act="relu", out_dtype=jnp.bfloat16):
    """3x3 'same' conv over the channel-concatenation of xs (no host concat:
    each input is a separate slab + weight block), folded BN, activation."""
    B, _, H, W = xs[0].shape
    w2 = W + 2
    pin, pout = (H + 3) * w2, H * w2
    cins = [int(x.shape[1]) for x in xs]
    cpads = [_rup16(c) for c in cins]
    slabs = [_slab(x, cp, w2) for x, cp in zip(xs, cpads)]
    cout = int(w.shape[0])
    wm = _prep_conv_w(w, cins, cpads, scale=bn_scale)
    bias = bn_shift.reshape(cout, 1).astype(jnp.float32)
    K = 9 * sum(cpads)

    out = pl.pallas_call(
        functools.partial(_conv_kernel, n_in=len(xs), w2=w2,
                          cpads=tuple(cpads), act=act),
        out_shape=jax.ShapeDtypeStruct((B, cout, pout), out_dtype),
        grid=(B,),
        in_specs=[pl.BlockSpec((1, cp, pin), lambda b: (b, 0, 0)) for cp in cpads]
                 + [pl.BlockSpec((cout, K), lambda b: (0, 0)),
                    pl.BlockSpec((cout, 1), lambda b: (0, 0))],
        out_specs=pl.BlockSpec((1, cout, pout), lambda b: (b, 0, 0)),
        scratch_shapes=[pltpu.VMEM((K, pout), jnp.bfloat16)],
        compiler_params=_CPARAMS,
    )(*slabs, wm, bias)
    # drop the two garbage columns per row
    return out.reshape(B, cout, H, w2)[:, :, :, :W]


def conv_gru(x, h, p):
    """Fused ConvGRU (single pallas_call per frame).  Returns (h', h') in f32.
    Note: h is re-quantised to bf16 for the conv/elementwise inputs; the
    update itself accumulates in f32."""
    B, C, H, W = x.shape
    if h is None:
        h = jnp.zeros((B, C, H, W), jnp.float32)
    w2 = W + 2
    pin, pout = (H + 3) * w2, H * w2
    cp = _rup16(C)
    K = 18 * cp

    x_slab = _slab(x, cp, w2)
    h_slab = _slab(h, cp, w2)
    wih, bih, whh, bhh = _prep_gru_w(p, C, cp)

    hn = pl.pallas_call(
        functools.partial(_gru_kernel, w2=w2, cp=cp),
        out_shape=jax.ShapeDtypeStruct((B, cp, pout), jnp.float32),
        grid=(B,),
        in_specs=[pl.BlockSpec((1, cp, pin), lambda b: (b, 0, 0)),
                  pl.BlockSpec((1, cp, pin), lambda b: (b, 0, 0)),
                  pl.BlockSpec((2 * cp, K), lambda b: (0, 0)),
                  pl.BlockSpec((2 * cp, 1), lambda b: (0, 0)),
                  pl.BlockSpec((cp, K), lambda b: (0, 0)),
                  pl.BlockSpec((cp, 1), lambda b: (0, 0))],
        out_specs=pl.BlockSpec((1, cp, pout), lambda b: (b, 0, 0)),
        scratch_shapes=[pltpu.VMEM((K, pout), jnp.bfloat16),
                        pltpu.VMEM((cp, pin), jnp.bfloat16)],
        compiler_params=_CPARAMS,
    )(x_slab, h_slab, wih, bih, whh, bhh)

    h_new = hn.reshape(B, cp, H, w2)[:, :C, :, :W]
    return h_new, h_new


def resample_hw(x, mh, mw, out_dtype=jnp.bfloat16):
    """Separable spatial resample (avgpool or bilinear-upsample+crop) with
    both 1-D passes in one kernel; intermediate lives in VMEM."""
    B, C, Hi, Wi = x.shape
    Ho, Wo = mh.shape[0], mw.shape[0]
    x2 = x.astype(jnp.bfloat16).reshape(B, C * Hi, Wi)        # free reshape in NCHW
    mwT = jnp.asarray(mw.T, jnp.bfloat16)
    mhb = jnp.asarray(mh, jnp.bfloat16)
    return pl.pallas_call(
        functools.partial(_resample_kernel, c=C),
        out_shape=jax.ShapeDtypeStruct((B, C, Ho, Wo), out_dtype),
        grid=(B,),
        in_specs=[pl.BlockSpec((1, C * Hi, Wi), lambda b: (b, 0, 0)),
                  pl.BlockSpec((Wi, Wo), lambda b: (0, 0)),
                  pl.BlockSpec((Ho, Hi), lambda b: (0, 0))],
        out_specs=pl.BlockSpec((1, C, Ho, Wo), lambda b: (b, 0, 0, 0)),
        scratch_shapes=[pltpu.VMEM((C * Hi, Wo), jnp.bfloat16)],
        compiler_params=_CPARAMS,
    )(x2, mwT, mhb)


# -----------------------------------------------------------------------------
# 1-D resampling matrices (numpy, built at trace time; O(H)+O(W) sized)
# -----------------------------------------------------------------------------
def _avgpool_1d(n_in, k):
    # AvgPool2d(k, k, count_include_pad=False, ceil_mode=True), one dimension.
    n_out = -(-n_in // k)
    m = np.zeros((n_out, n_in), dtype=np.float32)
    for i in range(n_out):
        lo, hi = i * k, min(i * k + k, n_in)
        m[i, lo:hi] = 1.0 / (hi - lo)
    return m


def _bilinear_1d(n_in, scale, n_out):
    # nn.Upsample(scale_factor=scale, mode='bilinear', align_corners=False),
    # keeping only the first n_out output rows (== upsample then crop).
    m = np.zeros((n_out, n_in), dtype=np.float32)
    for i in range(n_out):
        src = (i + 0.5) / scale - 0.5
        src = min(max(src, 0.0), float(n_in - 1))
        i0 = int(np.floor(src))
        i1 = min(i0 + 1, n_in - 1)
        w1 = src - i0
        m[i, i0] += 1.0 - w1
        m[i, i1] += w1
    return m


# -----------------------------------------------------------------------------
# Model blocks (NCHW throughout)
# -----------------------------------------------------------------------------
def bottleneck_block(x, r, p, channels):
    half = channels // 2
    a, b = x[:, :half], x[:, half:]
    b, r = conv_gru(b, r, p["gru"])
    return jnp.concatenate([a, b.astype(a.dtype)], axis=1), r


def upsampling_block(x, f, s, r, p, out_channels):
    Hs, Ws = s.shape[2], s.shape[3]
    Hi, Wi = x.shape[2], x.shape[3]
    xu = resample_hw(x, _bilinear_1d(Hi, 2, Hs), _bilinear_1d(Wi, 2, Ws))
    y = conv3x3_bn_relu([xu, f, s], p["conv_w"], p["bn_scale"], p["bn_shift"])
    half = out_channels // 2
    a, b = y[:, :half], y[:, half:]
    b, r = conv_gru(b, r, p["gru"])
    return jnp.concatenate([a, b.astype(a.dtype)], axis=1), r


def output_block(x, s, p):
    Hs, Ws = s.shape[2], s.shape[3]
    Hi, Wi = x.shape[2], x.shape[3]
    xu = resample_hw(x, _bilinear_1d(Hi, 4, Hs), _bilinear_1d(Wi, 4, Ws))
    y = conv3x3_bn_relu([xu, s], p["conv1_w"], p["bn1_scale"], p["bn1_shift"])
    y = conv3x3_bn_relu([y], p["conv2_w"], p["bn2_scale"], p["bn2_shift"],
                        out_dtype=jnp.float32)
    return y


def avg_pool_pyramid(s0):
    H, W = s0.shape[2], s0.shape[3]
    s1 = resample_hw(s0, _avgpool_1d(H, 4), _avgpool_1d(W, 4))
    s2 = resample_hw(s1, _avgpool_1d(s1.shape[2], 2), _avgpool_1d(s1.shape[3], 2))
    s3 = resample_hw(s2, _avgpool_1d(s2.shape[2], 2), _avgpool_1d(s2.shape[3], 2))
    return s1, s2, s3


def recurrent_decoder(params, s0, f1, f2, f3, f4,
                      r1=None, r2=None, r3=None, r4=None,
                      *, feature_channels, decoder_channels):
    """Inputs / outputs are NCHW (PyTorch convention), single-frame (4-D) path."""
    s1, s2, s3 = avg_pool_pyramid(s0)
    x4, r4 = bottleneck_block(f4, r4, params["decode4"], feature_channels[3])
    x3, r3 = upsampling_block(x4, f3, s3, r3, params["decode3"], decoder_channels[0])
    x2, r2 = upsampling_block(x3, f2, s2, r2, params["decode2"], decoder_channels[1])
    x1, r1 = upsampling_block(x2, f1, s1, r1, params["decode1"], decoder_channels[2])
    x0 = output_block(x1, s0, params["decode0"])
    return x0, r1, r2, r3, r4


# -----------------------------------------------------------------------------
# Deterministic synthetic parameters
# -----------------------------------------------------------------------------
def init_params(key, fc, dc):
    keys = iter(jax.random.split(key, 64))

    def conv_w(cout, cin):
        return jax.random.normal(next(keys), (cout, cin, 3, 3), jnp.float32) / np.sqrt(cin * 9)

    def bias(c):
        return 0.01 * jax.random.normal(next(keys), (c,), jnp.float32)

    def bn(c):
        gamma = 1.0 + 0.1 * jax.random.normal(next(keys), (c,), jnp.float32)
        beta = 0.05 * jax.random.normal(next(keys), (c,), jnp.float32)
        mean = 0.1 * jax.random.normal(next(keys), (c,), jnp.float32)
        var = 1.0 + 0.1 * jnp.abs(jax.random.normal(next(keys), (c,), jnp.float32))
        scale = gamma / jnp.sqrt(var + 1e-5)
        shift = beta - mean * scale
        return scale, shift

    def gru(c):
        return {"ih_w": conv_w(2 * c, 2 * c), "ih_b": bias(2 * c),
                "hh_w": conv_w(c, 2 * c), "hh_b": bias(c)}

    def upblock(cin, skip, out):
        sc, sh = bn(out)
        return {"conv_w": conv_w(out, cin + skip + 3),
                "bn_scale": sc, "bn_shift": sh, "gru": gru(out // 2)}

    params = {"decode4": {"gru": gru(fc[3] // 2)}}
    params["decode3"] = upblock(fc[3], fc[2], dc[0])
    params["decode2"] = upblock(dc[0], fc[1], dc[1])
    params["decode1"] = upblock(dc[1], fc[0], dc[2])
    s1c, s1h = bn(dc[3])
    s2c, s2h = bn(dc[3])
    params["decode0"] = {"conv1_w": conv_w(dc[3], dc[2] + 3),
                         "bn1_scale": s1c, "bn1_shift": s1h,
                         "conv2_w": conv_w(dc[3], dc[3]),
                         "bn2_scale": s2c, "bn2_shift": s2h}
    return params


# -----------------------------------------------------------------------------
if __name__ == "__main__":
    key = jax.random.PRNGKey(0)
    B, H, W = 2, 32, 32
    feature_channels = (4, 8, 8, 8)
    decoder_channels = (8, 8, 8, 4)

    ks = jax.random.split(key, 6)
    s0 = jax.random.normal(ks[0], (B, 3, H, W), jnp.float32)
    f1 = jax.random.normal(ks[1], (B, feature_channels[0], H // 4, W // 4), jnp.float32)
    f2 = jax.random.normal(ks[2], (B, feature_channels[1], H // 8, W // 8), jnp.float32)
    f3 = jax.random.normal(ks[3], (B, feature_channels[2], H // 16, W // 16), jnp.float32)
    f4 = jax.random.normal(ks[4], (B, feature_channels[3], H // 16, W // 16), jnp.float32)
    params = init_params(ks[5], feature_channels, decoder_channels)

    outs = recurrent_decoder(params, s0, f1, f2, f3, f4,
                             None, None, None, None,
                             feature_channels=feature_channels,
                             decoder_channels=decoder_channels)
    jax.block_until_ready(outs)

    x0, r1, r2, r3, r4 = outs
    assert x0.shape == (B, decoder_channels[3], H, W)
    assert r4.shape == (B, feature_channels[3] // 2, H // 16, W // 16)
    assert r3.shape == (B, decoder_channels[0] // 2, H // 16, W // 16)
    assert r2.shape == (B, decoder_channels[1] // 2, H // 8, W // 8)
    assert r1.shape == (B, decoder_channels[2] // 2, H // 4, W // 4)
    print("KERNEL_OK")
</pallas_src>

<mosaic_0001>
module attributes {stable_mosaic.version = 11 : i64} {
  func.func @_resample_kernel(%arg0: i32, %arg1: memref<1x96x32xbf16, #tpu.memory_space<vmem>>, %arg2: memref<32x8xbf16, #tpu.memory_space<vmem>>, %arg3: memref<8x32xbf16, #tpu.memory_space<vmem>>, %arg4: memref<1x3x8x8xbf16, #tpu.memory_space<vmem>>, %arg5: memref<96x8xbf16, #tpu.memory_space<vmem>>) attributes {dimension_semantics = [#tpu.dimension_semantics<parallel>], iteration_bounds = array<i64: 2>, scalar_prefetch = 0 : i64, scratch_operands = 1 : i64, tpu.core_type = #tpu.core_type<tc>, window_params = [{transform_indices = @transform_0, window_bounds = array<i64: 1, 96, 32>}, {pipeline_mode = #tpu.pipeline_mode<synchronous>, transform_indices = @transform_1, window_bounds = array<i64: 32, 8>}, {pipeline_mode = #tpu.pipeline_mode<synchronous>, transform_indices = @transform_2, window_bounds = array<i64: 8, 32>}, {transform_indices = @transform_3, window_bounds = array<i64: 1, 3, 8, 8>}]} {
    %c0 = arith.constant 0 : index
    %c0_0 = arith.constant 0 : index
    %c0_1 = arith.constant 0 : index
    %0 = vector.load %arg1[%c0, %c0_0, %c0_1] : memref<1x96x32xbf16, #tpu.memory_space<vmem>>, vector<1x96x32xbf16>
    %1 = vector.shape_cast %0 : vector<1x96x32xbf16> to vector<96x32xbf16>
    %c0_2 = arith.constant 0 : index
    %c0_3 = arith.constant 0 : index
    %2 = vector.load %arg2[%c0_2, %c0_3] : memref<32x8xbf16, #tpu.memory_space<vmem>>, vector<32x8xbf16>
    %cst = arith.constant dense<0.000000e+00> : vector<96x8xf32>
    %3 = tpu.matmul %1, %2, %cst {dimension_numbers = #tpu.dot_dimension_numbers<[1], [0], [0], [1], [0, 0, 1, 1], [], []>} : vector<96x32xbf16>, vector<32x8xbf16>, vector<96x8xf32> -> vector<96x8xf32>
    %4 = arith.truncf %3 : vector<96x8xf32> to vector<96x8xbf16>
    %c0_4 = arith.constant 0 : index
    %c0_5 = arith.constant 0 : index
    %5 = vector.load %arg5[%c0_4, %c0_5] : memref<96x8xbf16, #tpu.memory_space<vmem>>, vector<96x8xbf16>
    tpu.vector_store %arg5[%c0_4, %c0_5], %4 {strides = array<i32>} : memref<96x8xbf16, #tpu.memory_space<vmem>>, vector<96x8xbf16>,
    %c0_6 = arith.constant 0 : index
    %c0_7 = arith.constant 0 : index
    %6 = vector.load %arg3[%c0_6, %c0_7] : memref<8x32xbf16, #tpu.memory_space<vmem>>, vector<8x32xbf16>
    %c0_8 = arith.constant 0 : index
    %c0_9 = arith.constant 0 : index
    %7 = vector.load %arg5[%c0_8, %c0_9] : memref<96x8xbf16, #tpu.memory_space<vmem>>, vector<32x8xbf16>
    %cst_10 = arith.constant dense<0.000000e+00> : vector<8x8xf32>
    %8 = tpu.matmul %6, %7, %cst_10 {dimension_numbers = #tpu.dot_dimension_numbers<[1], [0], [0], [1], [0, 0, 1, 1], [], []>} : vector<8x32xbf16>, vector<32x8xbf16>, vector<8x8xf32> -> vector<8x8xf32>
    %9 = arith.truncf %8 : vector<8x8xf32> to vector<8x8xbf16>
    %c0_11 = arith.constant 0 : index
    %c0_12 = arith.constant 0 : index
    %c0_13 = arith.constant 0 : index
    %c0_14 = arith.constant 0 : index
    %10 = vector.load %arg4[%c0_11, %c0_12, %c0_13, %c0_14] : memref<1x3x8x8xbf16, #tpu.memory_space<vmem>>, vector<1x1x8x8xbf16>
    %11 = vector.shape_cast %10 : vector<1x1x8x8xbf16> to vector<8x8xbf16>
    %12 = vector.shape_cast %9 : vector<8x8xbf16> to vector<1x1x8x8xbf16>
    tpu.vector_store %arg4[%c0_11, %c0_12, %c0_13, %c0_14], %12 {strides = array<i32>} : memref<1x3x8x8xbf16, #tpu.memory_space<vmem>>, vector<1x1x8x8xbf16>,
    %c0_15 = arith.constant 0 : index
    %c0_16 = arith.constant 0 : index
    %13 = vector.load %arg3[%c0_15, %c0_16] : memref<8x32xbf16, #tpu.memory_space<vmem>>, vector<8x32xbf16>
    %c32 = arith.constant 32 : index
    %c0_17 = arith.constant 0 : index
    %14 = vector.load %arg5[%c32, %c0_17] : memref<96x8xbf16, #tpu.memory_space<vmem>>, vector<32x8xbf16>
    %cst_18 = arith.constant dense<0.000000e+00> : vector<8x8xf32>
    %15 = tpu.matmul %13, %14, %cst_18 {dimension_numbers = #tpu.dot_dimension_numbers<[1], [0], [0], [1], [0, 0, 1, 1], [], []>} : vector<8x32xbf16>, vector<32x8xbf16>, vector<8x8xf32> -> vector<8x8xf32>
    %16 = arith.truncf %15 : vector<8x8xf32> to vector<8x8xbf16>
    %c0_19 = arith.constant 0 : index
    %c1 = arith.constant 1 : index
    %c0_20 = arith.constant 0 : index
    %c0_21 = arith.constant 0 : index
    %17 = vector.load %arg4[%c0_19, %c1, %c0_20, %c0_21] : memref<1x3x8x8xbf16, #tpu.memory_space<vmem>>, vector<1x1x8x8xbf16>
    %18 = vector.shape_cast %17 : vector<1x1x8x8xbf16> to vector<8x8xbf16>
    %19 = vector.shape_cast %16 : vector<8x8xbf16> to vector<1x1x8x8xbf16>
    tpu.vector_store %arg4[%c0_19, %c1, %c0_20, %c0_21], %19 {strides = array<i32>} : memref<1x3x8x8xbf16, #tpu.memory_space<vmem>>, vector<1x1x8x8xbf16>,
    %c0_22 = arith.constant 0 : index
    %c0_23 = arith.constant 0 : index
    %20 = vector.load %arg3[%c0_22, %c0_23] : memref<8x32xbf16, #tpu.memory_space<vmem>>, vector<8x32xbf16>
    %c64 = arith.constant 64 : index
    %c0_24 = arith.constant 0 : index
    %21 = vector.load %arg5[%c64, %c0_24] : memref<96x8xbf16, #tpu.memory_space<vmem>>, vector<32x8xbf16>
    %cst_25 = arith.constant dense<0.000000e+00> : vector<8x8xf32>
    %22 = tpu.matmul %20, %21, %cst_25 {dimension_numbers = #tpu.dot_dimension_numbers<[1], [0], [0], [1], [0, 0, 1, 1], [], []>} : vector<8x32xbf16>, vector<32x8xbf16>, vector<8x8xf32> -> vector<8x8xf32>
    %23 = arith.truncf %22 : vector<8x8xf32> to vector<8x8xbf16>
    %c0_26 = arith.constant 0 : index
    %c2 = arith.constant 2 : index
    %c0_27 = arith.constant 0 : index
    %c0_28 = arith.constant 0 : index
    %24 = vector.load %arg4[%c0_26, %c2, %c0_27, %c0_28] : memref<1x3x8x8xbf16, #tpu.memory_space<vmem>>, vector<1x1x8x8xbf16>
    %25 = vector.shape_cast %24 : vector<1x1x8x8xbf16> to vector<8x8xbf16>
    %26 = vector.shape_cast %23 : vector<8x8xbf16> to vector<1x1x8x8xbf16>
    tpu.vector_store %arg4[%c0_26, %c2, %c0_27, %c0_28], %26 {strides = array<i32>} : memref<1x3x8x8xbf16, #tpu.memory_space<vmem>>, vector<1x1x8x8xbf16>,
    return
  }
  func.func @transform_0(%arg0: i32) -> (i32, i32, i32) {
    %c0_i32 = arith.constant 0 : i32
    %c0_i32_0 = arith.constant 0 : i32
    %c0_i32_1 = arith.constant 0 : i32
    return %arg0, %c0_i32, %c0_i32_0 : i32, i32, i32
  }
  func.func @transform_1(%arg0: i32) -> (i32, i32) {
    %c0_i32 = arith.constant 0 : i32
    %c0_i32_0 = arith.constant 0 : i32
    %c0_i32_1 = arith.constant 0 : i32
    return %c0_i32, %c0_i32_0 : i32, i32
  }
  func.func @transform_2(%arg0: i32) -> (i32, i32) {
    %c0_i32 = arith.constant 0 : i32
    %c0_i32_0 = arith.constant 0 : i32
    %c0_i32_1 = arith.constant 0 : i32
    return %c0_i32, %c0_i32_0 : i32, i32
  }
  func.func @transform_3(%arg0: i32) -> (i32, i32, i32, i32) {
    %c0_i32 = arith.constant 0 : i32
    %c0_i32_0 = arith.constant 0 : i32
    %c0_i32_1 = arith.constant 0 : i32
    %c0_i32_2 = arith.constant 0 : i32
    return %arg0, %c0_i32, %c0_i32_0, %c0_i32_1 : i32, i32, i32, i32
  }
}

</mosaic_0001>

<bundles_post_ra>
// kernel: tpu_custom_call.1
= control target key start
LH: loop header
LB: loop body
LE: loop exit
PB: predicated region body
PF: predicated region fallthrough
CT: control target
= control target key end

     0   :  { %8 = vsyncpa [#allocation4], 0  ;;  %s1265_s0 = inlined_call_operand.hbm [shape: bf16[2,96,32], index: 0, kind: input, shape index: {}]   ;;  %s1266_s1 = inlined_call_operand.hbm [shape: bf16[32,8], index: 1, kind: input, shape index: {}]   ;;  %s1267_s2 = inlined_call_operand.hbm [shape: bf16[8,32], index: 2, kind: input, shape index: {}]   ;;  %s1268_s3 = inlined_call_operand.hbm [shape: bf16[2,3,8,8], index: 3, kind: output, shape index: {}]  }
   0x1   :  { %10 = vsyncpa [#allocation4 + $0x1], 0 }
   0x2   :  { %11 = vsyncpa [#allocation7], 0 }
   0x3   :  { %12 = vsyncpa [#allocation5], 0 }
   0x4   :  { %14 = vsyncpa [#allocation5 + $0x1], 0  ;;  %s1003_s12 = smov 0   ;;  %s1005_s13 = smov 0  }
   0x5   :  { %s1007_s14 = smov 0   ;;  %s1009_s15 = smov 0  }
   0x6 LB: > { %s1024_s16 = sadd.s32 4294967295, %s971_s15   ;;  %s641_s17 = sadd.s32 4294967294, %s971_s15   ;;  %s971_s15 = sphi %s1009_s15, %s1288_s15   ;;  %s967_s14 = sphi %s1007_s14, %s1287_s14   ;;  %s963_s13 = sphi %s1005_s13, %s1286_s13   ;;  %s959_s12 = sphi %s1003_s12, %s1285_s12  }
   0x7   : > { %p40_p0 = scmp.ne.s32.totalorder %s963_s13, %s959_s12  ;;  %p1269_p1 = scmp.eq.s32.totalorder %s1024_s16, 0 }
   0x8   : > { %p112_p3 = scmp.eq.s32.totalorder %s641_s17, 1  ;;  %p642_p5 = scmp.ge.s32.totalorder %s971_s15, 1 }
   0x9   : > { %p1033_p4 = por %p1269_p1, %p40_p0  ;;  %p119_p7 = scmp.lt.s32.totalorder %s971_s15, 3 }
   0xa   : > { %p1038_p6 = por %p112_p3, %p40_p0  ;;  %s973_s21 = smov [#allocation6]  }
   0xb   : > { %s1272_s18 = scalar_select %p1033_p4, 1, 0 }
   0xc   : > { %s1273_s19 = scalar_select %p1038_p6, 1, 0 }
   0xd   : > { %p1043_p8 = pnand %p642_p5, %p119_p7  ;;  %s131_s22 = sshll.u32 %s973_s21, 4  ;;  %s1047_s22 = int_to_ptr.vmem [resolvable:$true] %s131_s22 }
   0xe   : > { %s974_s24 = smov [#allocation8]   ;;  %s815_s28 = scalar_lea.hbm %s1266_s1, 256 }
   0xf   : > { %p746_p9 = pneg %p1043_p8  ;;  %s145_s25 = sshll.u32 %s974_s24, 4  ;;  %s1058_s25 = int_to_ptr.vmem [resolvable:$true] %s145_s25 }
  0x10   : > { %p816_p12 = scmp.ne.s32.totalorder %s1266_s1, %s815_s28  ;;  %p822_p5 = scmp.lt.u32.totalorder %s815_s28, %s1266_s1 }
  0x11   : > { %p1054_p11 = pnand %p746_p9, %p1269_p1 }
  0x13   : > { %p817_p13 = pneg %p1054_p11 }
  0x15   : > { %p818_p0 = pnand %p817_p13, %p816_p12 }
  0x17   : > { %p819_p3 = pneg %p818_p0 }
  0x19   : > { %p824_p7 = pnand %p822_p5, %p819_p3 }
  0x1b   : > { %827 = shalt.err (!%p824_p7)
}
  0x1c   : > { %s828_s6 = scalar_lea.vmem %s1047_s22, 256  ;;  %p836_p2 = scmp.lt.s32.totalorder %s1047_s22, %s1047_s22 }
  0x1d   : > { %p829_p9 = scmp.ne.s32.totalorder %s1047_s22, %s828_s6  ;;  %p837_p12 = scmp.lt.s32.totalorder %s828_s6, %s828_s6 }
  0x1f   : > { %p831_p10 = pnand %p829_p9, %p817_p13  ;;  %p838_p0 = por %p837_p12, %p836_p2 }
  0x21   : > { %p832_p1 = pneg %p831_p10 }
  0x23   : > { %p839_p6 = pnand %p838_p0, %p832_p1 }
  0x25   : > { %842 = shalt.err (!%p839_p6)
}
  0x26   : > { %s975_s7 = smov 64   ;;  %s976_s8 = smov 4  }
  0x27   : > { %749 = dma.hbm_to_vmem [thread:$0]  (!%p1054_p11), %s1266_s1, 256, %s1047_s22, [#allocation7], %s975_s7, %s975_s7, %s976_s8  }
  0x28   : > { %s843_s21 = scalar_lea.hbm %s1267_s2, 64 }
  0x29   : > { %p844_p1 = scmp.ne.s32.totalorder %s1267_s2, %s843_s21  ;;  %p850_p10 = scmp.lt.u32.totalorder %s843_s21, %s1267_s2 }
  0x2b   : > { %p846_p2 = pnand %p844_p1, %p817_p13 }
  0x2d   : > { %p847_p6 = pneg %p846_p2 }
  0x2f   : > { %p852_p3 = pnand %p850_p10, %p847_p6 }
  0x31   : > { %855 = shalt.err (!%p852_p3)
}
  0x32   : > { %s856_s22 = scalar_lea.vmem %s1058_s25, 64  ;;  %p864_p12 = scmp.lt.s32.totalorder %s1058_s25, %s1058_s25 }
  0x33   : > { %p857_p5 = scmp.ne.s32.totalorder %s1058_s25, %s856_s22  ;;  %p865_p0 = scmp.lt.s32.totalorder %s856_s22, %s856_s22 }
  0x35   : > { %p859_p7 = pnand %p857_p5, %p817_p13  ;;  %p866_p1 = por %p865_p0, %p864_p12 }
  0x37   : > { %p860_p9 = pneg %p859_p7 }
  0x39   : > { %p867_p2 = pnand %p866_p1, %p860_p9 }
  0x3b   : > { %870 = shalt.err (!%p867_p2)
}
  0x3c   : > { %752 = dma.hbm_to_vmem [thread:$0]  (!%p1054_p11), %s1267_s2, 64, %s1058_s25, [#allocation7]  }
  0x3d   : > { %s1116_s4 = sadd.s32 1, %s971_s15   ;;  %s27_s23 = sadd.s32 1, %s967_s14 }
  0x3e   : > { %s24_s5 = ssub.s32 %s971_s15, %s1116_s4  ;;  %p34_p13 = scmp.ne.s32.totalorder %s967_s14, %s963_s13 }
  0x3f   : > { %p25_p6 = scmp.eq.s32.totalorder %s24_s5, 0  ;;  %p35_p10 = scmp.eq.s32.totalorder %s971_s15, 0 }
  0x40   : > { %p1276_p3 = scmp.eq.s32.totalorder %s1024_s16, 1  ;;  %p763_p7 = scmp.lt.s32.totalorder %s971_s15, 2 }
  0x41   : > { %s1132_s9 = scalar_select %p25_p6, %s967_s14, %s27_s23  }
  0x42   : > { %p1126_p5 = por %p1276_p3, %p34_p13  ;;  %p36_p9 = por %p35_p10, %p34_p13 }
  0x43   : > { %s156_s10 = sand.u32 1, %s967_s14   ;;  %s730_s25 = smul.u32 768, %s971_s15 }
  0x44   : > { %s1277_s6 = scalar_select %p1126_p5, 1, 0 }
  0x45   : > { %s729_s11 = smul.u32 48, %s156_s10  ;;  %p1136_p11 = pnand %p763_p7, %p36_p9 }
  0x46   : > { %s1143_s26 = scalar_lea.hbm %s1265_s0, %s730_s25  ;;  %s1147_s22 = scalar_lea.sflag [#allocation4], %s156_s10 }
  0x47   : > { %s160_s27 = scalar_lea.vmem [#allocation3], %s729_s11  ;;  %s871_s29 = scalar_lea.hbm %s1143_s26, 768 }
  0x48   : > { %s167_s28 = sshll.u32 %s160_s27, 4  ;;  %p872_p12 = scmp.ne.s32.totalorder %s1143_s26, %s871_s29  ;;  %s1145_s28 = int_to_ptr.vmem [resolvable:$true] %s167_s28 }
  0x49   : > { %p873_p0 = pneg %p1136_p11  ;;  %s876_s5 = scalar_lea.hbm %s1265_s0, 1536 }
  0x4a   : > { %p877_p13 = scmp.lt.u32.totalorder %s1143_s26, %s1265_s0  ;;  %p878_p6 = scmp.lt.u32.totalorder %s876_s5, %s871_s29 }
  0x4b   : > { %p874_p1 = pnand %p873_p0, %p872_p12  ;;  %p880_p3 = scmp.lt.u32.totalorder %s871_s29, %s1143_s26 }
  0x4c   : > { %p879_p10 = por %p878_p6, %p877_p13 }
  0x4d   : > { %p875_p2 = pneg %p874_p1 }
  0x4e   : > { %p881_p7 = por %p880_p3, %p879_p10 }
  0x50   : > { %p882_p9 = pnand %p881_p7, %p875_p2 }
  0x52   : > { %885 = shalt.err (!%p882_p9)
}
  0x53   : > { %s886_s10 = scalar_lea.vmem %s1145_s28, 768  ;;  %s977_s11 = smov [#allocation3]  }
  0x54   : > { %p887_p12 = scmp.ne.s32.totalorder %s1145_s28, %s886_s10  ;;  %s891_s24 = sshll.u32 %s977_s11, 4  ;;  %s892_s24 = int_to_ptr.vmem [resolvable:$false] %s891_s24 }
  0x55   : > { %s893_s27 = scalar_lea.vmem %s892_s24, 1536  ;;  %p894_p4 = scmp.lt.s32.totalorder %s1145_s28, %s892_s24 }
  0x56   : > { %p889_p1 = pnand %p887_p12, %p873_p0  ;;  %p895_p13 = scmp.lt.s32.totalorder %s893_s27, %s886_s10 }
  0x58   : > { %p890_p5 = pneg %p889_p1  ;;  %p896_p6 = por %p895_p13, %p894_p4 }
  0x5a   : > { %p897_p10 = pnand %p896_p6, %p890_p5 }
  0x5c   : > { %900 = shalt.err (!%p897_p10)
}
  0x5d   : > { %756 = dma.hbm_to_vmem [thread:$0]  (!%p1136_p11), %s1143_s26, 768, %s1145_s28, %s1147_s22, %s975_s7, %s975_s7, %s976_s8  }
  0x5e   : > { %179 = sbr.rel (%p1043_p8) target bundleno = 591 (0x24f), region = 32  ;;  %s1181_s29 = sand.u32 (!%p1043_p8), 1, %s963_s13  }
  0x5f   : > { %s731_s30 = smul.u32 (!%p1043_p8), 48, %s1181_s29  ;;  %s182_s23 = scalar_lea.sflag (!%p1043_p8), [#allocation4], %s1181_s29 }
  0x60   : > { %p1279_p4 = scmp.ne.s32.totalorder (!%p1043_p8), %s1272_s18, 0 }
  0x61   : > { %s185_s5 = scalar_lea.vmem (!%p1043_p8), [#allocation3], %s731_s30 }
  0x65   : > { %946 = dma.done.wait (%p1279_p4), %s182_s23, 768  }
  0x66   : > { %948 = vsyncadd (%p1279_p4), %s182_s23, 4294966528  ;;  %p1280_p5 = scmp.eq.s32.totalorder %s1024_s16, 0 }
  0x68   : > { %950 = dma.done.wait (%p1280_p5), [#allocation7], 320   ;;  %p1281_p11 = pmov %p1280_p5 }
  0x69   : > { %v807_v0 = vld [vmem:[#allocation6] sm:$0xff]   ;;  %v808_v1 = vld [vmem:[#allocation6 + $0x8] sm:$0xff]   ;;  %vm275_vm0 = vcmask 261120   ;;  %v978_v8 = vmov 0.0   ;;  %vm979_vm1 = vmmov 0   ;;  %vm381_vm2 = vcmask 64512  }
  0x6a   : > { %952 = vsyncadd (%p1281_p11), [#allocation7], 4294966976  ;;  %689 = vmatprep.subr.bf16.mxu0 %v807_v0  ;;  %v809_v2 = vld [vmem:[%s185_s5] sm:$0xff]   ;;  %v810_v3 = vld [vmem:[%s185_s5 + $0x8] sm:$0xff]   ;;  %705 = vmatprep.subr.bf16.mxu1 %v978_v8  ;;  %s732_s18 = smul.u32 12, %s1181_s29  ;;  %vm435_vm3 = vcmask 60416  }
  0x6b   : > { %690 = vmatpush3.bf16.msra.mxu0 %v807_v0  ;;  %693 = vmatprep.mubr.msk.bf16.mxu0 %vm275_vm0, %v809_v2  ;;  %v811_v4 = vld [vmem:[%s185_s5 + $0x10] sm:$0xff]   ;;  %v812_v5 = vld [vmem:[%s185_s5 + $0x18] sm:$0xff]   ;;  %v813_v6 = vld [vmem:[%s185_s5 + $0x20] sm:$0xff]   ;;  %s733_s8 = smul.u32 192, %s1024_s16  ;;  %s536_s22 = scalar_lea.sflag [#allocation5], %s1181_s29 }
  0x6c   : > { %691 = vmatprep.subr.bf16.mxu0 %v808_v1  ;;  %v814_v7 = vld [vmem:[%s185_s5 + $0x28] sm:$0xff]   ;;  %709 = vmatprep.mubr.msk.bf16.mxu1 %vm979_vm1, %v978_v8  ;;  %v388_v26 = vld [vmem:[#allocation8] sm:$0xf]  ;;  %s215_s20 = scalar_lea.vmem [#allocation9], %s732_s18  ;;  %p1282_p0 = scmp.ne.s32.totalorder %s1277_s6, 0 }
  0x6d   : > { %v437_v32 = vld [vmem:[#allocation8] sm:$0xf]  ;;  %s549_s7 = sshll.u32 %s215_s20, 4  ;;  %s1220_s28 = scalar_lea.hbm %s1268_s3, %s733_s8  ;;  %s1215_s7 = int_to_ptr.vmem [resolvable:$true] %s549_s7 }
  0x6e   : > { %v486_v35 = vld [vmem:[#allocation8] sm:$0xf]  ;;  %s901_s25 = scalar_lea.vmem %s1215_s7, 192  ;;  %s980_s16 = smov [#allocation9]  }
  0x6f   : > { %692 = vmatpush3.bf16.msra.mxu0 %v808_v1  ;;  %p902_p8 = scmp.ne.s32.totalorder %s1215_s7, %s901_s25  ;;  %s905_s21 = sshll.u32 %s980_s16, 4  ;;  %s906_s21 = int_to_ptr.vmem [resolvable:$false] %s905_s21 }
  0x70   : > { %s907_s10 = scalar_lea.vmem %s906_s21, 384  ;;  %p908_p7 = scmp.lt.s32.totalorder %s1215_s7, %s906_s21 }
  0x71   : > { %p903_p2 = pnand %p902_p8, %p1282_p0  ;;  %p909_p9 = scmp.lt.s32.totalorder %s907_s10, %s901_s25 }
  0x72   : > { %694 = vmatmul.mubr.msk.bf16.vlgmr.msra.gmra.mrb[0].mxu0 %vm275_vm0, %v810_v3 }
  0x73   : > { %697 = vmatprep.mubr.msk.bf16.mxu0 %vm275_vm0, %v811_v4  ;;  %p904_p3 = pneg %p903_p2  ;;  %p910_p12 = por %p909_p9, %p908_p7 }
  0x75   : > { %p911_p1 = pnand %p910_p12, %p904_p3 }
  0x7a   : > { %698 = vmatmul.mubr.msk.bf16.gmra.mrb[4].mxu0 %vm275_vm0, %v812_v5 }
  0x7b   : > { %701 = vmatprep.mubr.msk.bf16.mxu0 %vm275_vm0, %v813_v6 }
  0x82   : > { %702 = vmatmul.mubr.msk.bf16.gmra.mrb[8].mxu0 %vm275_vm0, %v814_v7 }
 0x145   : > { %v695_v9 = vpop.f32.mrb[0].mxu0 }
 0x146   : > { %v328_v10 = vpop.f32.mrb[1].mxu0 }
 0x147   : > { %v696_v11 = vpop.f32.mrb[2].mxu0 }
 0x148   : > { %v376_v12 = vpack.c.bf16 %v696_v11, %v695_v9  ;;  %v331_v13 = vpop.f32.mrb[3].mxu0 }
 0x149   : > { %v375_v14 = vpack.c.bf16 %v331_v13, %v328_v10 }
 0x14a   : > { %383 = vst.msk [vmem:[#allocation2 + $0x8] sm:$0xff] %vm381_vm2, %v376_v12 }
 0x14b   : > { %382 = vst.msk [vmem:[#allocation2] sm:$0xff] %vm381_vm2, %v375_v14 }
 0x14d   : > { %v699_v15 = vpop.f32.mrb[4].mxu0 }
 0x14e   : > { %v344_v16 = vpop.f32.mrb[5].mxu0 }
 0x14f   : > { %v700_v17 = vpop.f32.mrb[6].mxu0 }
 0x150   : > { %v378_v18 = vpack.c.bf16 %v700_v17, %v699_v15  ;;  %v347_v19 = vpop.f32.mrb[7].mxu0 }
 0x151   : > { %v377_v20 = vpack.c.bf16 %v347_v19, %v344_v16  ;;  %v390_v24 = vld [vmem:[#allocation2 + $0x8] sm:$0xff] }
 0x152   : > { %385 = vst.msk [vmem:[#allocation2 + $0x18] sm:$0xff] %vm381_vm2, %v378_v18  ;;  %v389_v21 = vld [vmem:[#allocation2] sm:$0xff] }
 0x153   : > { %384 = vst.msk [vmem:[#allocation2 + $0x10] sm:$0xff] %vm381_vm2, %v377_v20  ;;  %706 = vmatpush3.bf16.msra.mxu1 %v389_v21 }
 0x154   : > { %707 = vmatprep.subr.bf16.mxu1 %v978_v8 }
 0x155   : > { %v703_v22 = vpop.f32.mrb[8].mxu0 }
 0x156   : > { %v360_v23 = vpop.f32.mrb[9].mxu0 }
 0x157   : > { %v704_v25 = vpop.f32.mrb[10].mxu0  ;;  %708 = vmatpush3.bf16.msra.mxu1 %v390_v24 }
 0x158   : > { %v380_v27 = vpack.c.bf16 %v704_v25, %v703_v22  ;;  %v363_v28 = vpop.f32.mrb[11].mxu0  ;;  %713 = vmatprep.subr.bf16.mxu1 %v978_v8 }
 0x159   : > { %v379_v29 = vpack.c.bf16 %v363_v28, %v360_v23  ;;  %v439_v31 = vld [vmem:[#allocation2 + $0x18] sm:$0xff] }
 0x15a   : > { %387 = vst.msk [vmem:[#allocation2 + $0x28] sm:$0xff] %vm381_vm2, %v380_v27  ;;  %710 = vmatmul.mubr.msk.bf16.vlgmr.msra.gmra.mrb[0].mxu1 %vm275_vm0, %v388_v26  ;;  %v438_v30 = vld [vmem:[#allocation2 + $0x10] sm:$0xff] }
 0x15b   : > { %386 = vst.msk [vmem:[#allocation2 + $0x20] sm:$0xff] %vm381_vm2, %v379_v29  ;;  %714 = vmatpush3.bf16.msra.mxu1 %v438_v30  ;;  %717 = vmatprep.mubr.msk.bf16.mxu1 %vm979_vm1, %v978_v8 }
 0x15c   : > { %715 = vmatprep.subr.bf16.mxu1 %v978_v8 }
 0x15f   : > { %716 = vmatpush3.bf16.msra.mxu1 %v439_v31 }
 0x160   : > { %721 = vmatprep.subr.bf16.mxu1 %v978_v8 }
 0x161   : > { %v488_v34 = vld [vmem:[#allocation2 + $0x28] sm:$0xff] }
 0x162   : > { %718 = vmatmul.mubr.msk.bf16.vlgmr.msra.gmra.mrb[4].mxu1 %vm275_vm0, %v437_v32  ;;  %v487_v33 = vld [vmem:[#allocation2 + $0x20] sm:$0xff] }
 0x163   : > { %722 = vmatpush3.bf16.msra.mxu1 %v487_v33  ;;  %725 = vmatprep.mubr.msk.bf16.mxu1 %vm979_vm1, %v978_v8 }
 0x164   : > { %723 = vmatprep.subr.bf16.mxu1 %v978_v8 }
 0x167   : > { %724 = vmatpush3.bf16.msra.mxu1 %v488_v34 }
 0x16a   : > { %726 = vmatmul.mubr.msk.bf16.vlgmr.msra.gmra.mrb[8].mxu1 %vm275_vm0, %v486_v35 }
 0x22d   : > { %v428_v36 = vpop.f32.mrb[0].mxu1 }
 0x22e   : > { %v434_v37 = vpack.c.bf16 %v428_v36, %v428_v36  ;;  %v711_v38 = vpop.f32.mrb[1].mxu1 }
 0x22f   : > { %v431_v39 = vpop.f32.mrb[2].mxu1 }
 0x230   : > { %436 = vst.msk [vmem:[%s215_s20] sm:$0xf] %vm435_vm3, %v434_v37  ;;  %v712_v40 = vpop.f32.mrb[3].mxu1 }
 0x235   : > { %v477_v41 = vpop.f32.mrb[4].mxu1 }
 0x236   : > { %v483_v42 = vpack.c.bf16 %v477_v41, %v477_v41  ;;  %v719_v43 = vpop.f32.mrb[5].mxu1 }
 0x237   : > { %v480_v44 = vpop.f32.mrb[6].mxu1 }
 0x238   : > { %666 = vst.msk [vmem:[%s215_s20 + $0x4] sm:$0xf] %vm435_vm3, %v483_v42  ;;  %v720_v45 = vpop.f32.mrb[7].mxu1 }
 0x23d   : > { %v526_v46 = vpop.f32.mrb[8].mxu1 }
 0x23e   : > { %v532_v47 = vpack.c.bf16 %v526_v46, %v526_v46  ;;  %v727_v48 = vpop.f32.mrb[9].mxu1 }
 0x23f   : > { %v529_v49 = vpop.f32.mrb[10].mxu1 }
 0x240   : > { %668 = vst.msk [vmem:[%s215_s20 + $0x8] sm:$0xf] %vm435_vm3, %v532_v47  ;;  %v728_v50 = vpop.f32.mrb[11].mxu1 }
 0x241   : > { %914 = shalt.err (!%p911_p1)
}
 0x242   : > { %s915_s11 = scalar_lea.hbm %s1220_s28, 192  ;;  %s919_s30 = scalar_lea.hbm %s1268_s3, 384 }
 0x243   : > { %p916_p13 = scmp.ne.s32.totalorder %s1220_s28, %s915_s11  ;;  %p920_p4 = scmp.lt.u32.totalorder %s1220_s28, %s1268_s3 }
 0x244   : > { %p921_p5 = scmp.lt.u32.totalorder %s919_s30, %s915_s11  ;;  %p923_p8 = scmp.lt.u32.totalorder %s915_s11, %s1220_s28 }
 0x245   : > { %p917_p6 = pnand %p916_p13, %p1282_p0 }
 0x246   : > { %p922_p11 = por %p921_p5, %p920_p4 }
 0x247   : > { %p918_p10 = pneg %p917_p6 }
 0x248   : > { %p924_p2 = por %p923_p8, %p922_p11 }
 0x24a   : > { %p925_p3 = pnand %p924_p2, %p918_p10 }
 0x24c   : > { %928 = shalt.err (!%p925_p3)
}
 0x24d   : > { %s981_s18 = smov 64   ;;  %s982_s20 = smov 4  }
 0x24e   : > { %744 = dma.vmem_to_hbm [thread:$0]  (%p1282_p0), %s1215_s7, 192, %s1220_s28, %s536_s22, %s981_s18, %s981_s18, %s982_s20  }
 0x24f PF: > { %s564_s8 = sand.u32 1, %s959_s12   ;;  %p1283_p7 = scmp.ne.s32.totalorder %s1273_s19, 0 }
 0x250   : > { %p1284_p9 = scmp.ge.s32.totalorder %s971_s15, 2  ;;  %s565_s17 = scalar_lea.sflag [#allocation5], %s564_s8 }
 0x252   : > { %p758_p12 = pnand %p1284_p9, %p1283_p7 }
 0x254   : > { %954 = dma.done.wait (!%p758_p12), %s565_s17, 192  }
 0x255   : > { %956 = vsyncadd (!%p758_p12), %s565_s17, 4294967104  ;;  %p17_p1 = scmp.ge.s32.totalorder %s1116_s4, 4   ;;  %s1285_s12 = smov %s963_s13 }
 0x256   : > { %s1286_s13 = smov %s967_s14  ;;  %s1287_s14 = smov %s1132_s9 }
 0x257   : > { %s1288_s15 = smov %s1116_s4  ;;  %19 = sbr.rel (!%p17_p1) target bundleno = 6 (0x6), region = 87 }
 0x25e   :  { %570 = vsyncpa [#allocation4], 1 }
 0x25f   :  { %572 = vsyncpa [#allocation4 + $0x1], 1 }
 0x260   :  { %573 = vsyncpa [#allocation7], 1 }
 0x261   :  { %574 = vsyncpa [#allocation5], 1 }
 0x262   :  { %576 = vsyncpa [#allocation5 + $0x1], 1 }

</bundles_post_ra>
